<compile_context>
chip_gen: v5e
topology: v5e:2x2
jax: 0.10.0
libtpu: 0.0.40
codegen_flags: <defaults>
</compile_context>

<pallas_src>
import jax
import jax.numpy as jnp
from jax import lax
from jax.experimental import pallas as pl
from jax.experimental.pallas import tpu as pltpu

# ---------------------------------------------------------------------------
# Model hyperparameters (small shapes consistent with the module's forward).
# ---------------------------------------------------------------------------
H = 16
W = 16
NUM_CLASSES = 6
NUM_LAYERS = 7          # hidden Linear layers in self.layers
HIDDEN_DIM = 16
INPUT_DIM = 3 * H * W   # 768
BATCH = 2
LN_EPS = 1e-5
OUT_PAD = 8             # logits padded 6 -> 8 (full-extent last dim)
MAX_BATCH_TILE = 1024   # batch rows per grid step (sweep 512-2048 on HW)

# Rows of the packed small-parameter array (f32, shape (9, HIDDEN_DIM)):
#   row 0     : bias of the first Linear
#   rows 1..6 : biases of the remaining hidden Linears
#   row 7     : LayerNorm gamma   (the module shares ONE nn.LayerNorm)
#   row 8     : LayerNorm beta
_ROW_B0 = 0
_ROW_BH = 1
_ROW_GAMMA = NUM_LAYERS          # 7
_ROW_BETA = NUM_LAYERS + 1       # 8
_NUM_SMALL_ROWS = NUM_LAYERS + 2  # 9

# x @ W.T with the contraction ('in') axis on the lane dim of BOTH operands.
_LANE_CONTRACT = (((1,), (1,)), ((), ()))


def _layernorm_fused(h, gamma, beta):
    """nn.LayerNorm (biased variance, eps=1e-5) via independent sum / sum-sq."""
    inv_n = 1.0 / h.shape[-1]
    s1 = jnp.sum(h, axis=-1, keepdims=True)
    s2 = jnp.sum(h * h, axis=-1, keepdims=True)
    mu = s1 * inv_n
    var = jnp.maximum(s2 * inv_n - mu * mu, 0.0)
    return (h - mu) * lax.rsqrt(var + LN_EPS) * gamma + beta


def mlp_deep_kernel(x_ref, w0_ref, wh_ref, wo_ref, p16_ref, bo_ref, out_ref):
    """Whole MLP forward for one batch tile, entirely in VMEM.

    x_ref  : (bt, INPUT_DIM)                         f32   flattened image tile
    w0_ref : (HIDDEN_DIM, INPUT_DIM)                 bf16  first Linear, (out, in)
    wh_ref : (NUM_LAYERS-1, HIDDEN_DIM, HIDDEN_DIM)  bf16  hidden Linears, (out, in)
    wo_ref : (HIDDEN_DIM, OUT_PAD)                   bf16  output Linear, (in, out) zero-padded
    p16_ref: (9, HIDDEN_DIM)                         f32   packed biases + LN gamma/beta
    bo_ref : (1, OUT_PAD)                            f32   output bias, zero-padded
    out_ref: (bt, OUT_PAD)                           f32   padded logits
    """
    gamma = p16_ref[_ROW_GAMMA:_ROW_GAMMA + 1, :]
    beta = p16_ref[_ROW_BETA:_ROW_BETA + 1, :]

    # In-kernel f32 -> bf16 pack (cheap VPU op); avoids the wrapper-side bf16
    # copy of x that previously cost an extra full HBM pass.
    x = x_ref[...].astype(jnp.bfloat16)

    # First hidden layer: 768-wide contraction on lanes of both operands (MXU).
    # NOTE: verify with a bundle dump that this layout does not emit a per-step
    # XLU transpose of w0; if it does, pre-transpose w0 to (768, 16) offline.
    h = lax.dot_general(x, w0_ref[...],
                        dimension_numbers=_LANE_CONTRACT,
                        preferred_element_type=jnp.float32)
    h = h + p16_ref[_ROW_B0:_ROW_B0 + 1, :]
    h = jnp.maximum(_layernorm_fused(h, gamma, beta), 0.0)

    # Remaining hidden layers (static unroll; one shared LayerNorm, per module).
    # TODO(synk): v7x — pack 8 batch rows' 16-wide hidden state into one
    #   128-lane row (block-diagonal matmuls / LN reduces) if bundle dumps show
    #   VALU/XLU saturating at 3.2 TB/s HBM.
    # TODO(synk): v5e small-batch latency — replace these (bt,16)x(16,16) MXU
    #   round trips with VPU broadcast-multiply + lane reduce.
    for i in range(NUM_LAYERS - 1):
        h = lax.dot_general(h.astype(jnp.bfloat16), wh_ref[i],
                            dimension_numbers=_LANE_CONTRACT,
                            preferred_element_type=jnp.float32)
        h = h + p16_ref[_ROW_BH + i:_ROW_BH + i + 1, :]
        h = jnp.maximum(_layernorm_fused(h, gamma, beta), 0.0)

    # Output layer into an 8-lane padded block (classes 6 -> 8, f32 to keep the
    # 2e-3 tolerance; bf16 writeback would halve it again but risks tolerance).
    out = jnp.dot(h.astype(jnp.bfloat16), wo_ref[...],
                  preferred_element_type=jnp.float32)
    out_ref[...] = (out + bo_ref[...]).astype(out_ref.dtype)


def _round_up(x, m):
    return ((x + m - 1) // m) * m


def _pick_batch_tile(b):
    """Batch rows per grid step.

    * <= MAX_BATCH_TILE (VMEM / per-step amortization sweet spot).
    * multiple of 8 (sublane) unless the whole batch fits in one sub-8 tile.
    * >= 2 grid tiles once b >= 16, so v7x's second TensorCore gets work.
    """
    if b <= 8:
        return b
    return min(MAX_BATCH_TILE, _round_up(-(-b // 2), 8))


@jax.jit
def mlp_classifier_deep_forward(x_img, params):
    """x_img: (B, 3, H, W) float32 -> logits (B, NUM_CLASSES) float32."""
    b = x_img.shape[0]
    # nn.Flatten: contiguous row-major reshape over (C, H, W); free in XLA.
    # Stays f32 here — the bf16 cast happens inside the kernel (no HBM copy).
    x_flat = x_img.reshape(b, -1)

    bt = _pick_batch_tile(b)
    n_tiles = pl.cdiv(b, bt)   # ragged tail handled by Pallas partial blocks

    out = pl.pallas_call(
        mlp_deep_kernel,
        out_shape=jax.ShapeDtypeStruct((b, OUT_PAD), jnp.float32),
        grid=(n_tiles,),
        in_specs=[
            pl.BlockSpec((bt, INPUT_DIM), lambda i: (i, 0)),               # x (batch-tiled, f32)
            pl.BlockSpec((HIDDEN_DIM, INPUT_DIM), lambda i: (0, 0)),       # w0 (VMEM-resident)
            pl.BlockSpec((NUM_LAYERS - 1, HIDDEN_DIM, HIDDEN_DIM),
                         lambda i: (0, 0, 0)),                             # wh (VMEM-resident)
            pl.BlockSpec((HIDDEN_DIM, OUT_PAD), lambda i: (0, 0)),         # wo (VMEM-resident)
            pl.BlockSpec((_NUM_SMALL_ROWS, HIDDEN_DIM), lambda i: (0, 0)), # packed biases + LN
            pl.BlockSpec((1, OUT_PAD), lambda i: (0, 0)),                  # output bias
        ],
        out_specs=pl.BlockSpec((bt, OUT_PAD), lambda i: (i, 0)),
        compiler_params=pltpu.CompilerParams(
            dimension_semantics=("parallel",),
            # ~6-7 MB footprint at bt=1024 (2x3 MB f32 x buffers + weights);
            # 32 MiB limit gives headroom on v5e (16 MiB scoped default) while
            # staying within v7x's 64 MiB physical VMEM per TC.
            vmem_limit_bytes=32 * 1024 * 1024),
    )(x_flat, params["w0"], params["wh"], params["wo"],
      params["p16"], params["bo"])

    return out[:, :NUM_CLASSES]


# ---------------------------------------------------------------------------
# Parameter construction (PyTorch layout -> packed kernel layout).
# ---------------------------------------------------------------------------
def init_torch_params(key):
    """Synthetic parameters with nn.Linear / nn.LayerNorm shapes and init ranges."""
    ks = jax.random.split(key, 6)
    s0 = 1.0 / jnp.sqrt(INPUT_DIM)
    sh = 1.0 / jnp.sqrt(HIDDEN_DIM)
    return {
        "W0": jax.random.uniform(ks[0], (HIDDEN_DIM, INPUT_DIM), jnp.float32, -s0, s0),
        "b0": jax.random.uniform(ks[1], (HIDDEN_DIM,), jnp.float32, -s0, s0),
        "Wh": jax.random.uniform(ks[2], (NUM_LAYERS - 1, HIDDEN_DIM, HIDDEN_DIM),
                                 jnp.float32, -sh, sh),
        "bh": jax.random.uniform(ks[3], (NUM_LAYERS - 1, HIDDEN_DIM), jnp.float32, -sh, sh),
        "gamma": jnp.ones((HIDDEN_DIM,), jnp.float32),   # nn.LayerNorm defaults
        "beta": jnp.zeros((HIDDEN_DIM,), jnp.float32),
        "Wo": jax.random.uniform(ks[4], (NUM_CLASSES, HIDDEN_DIM), jnp.float32, -sh, sh),
        "bo": jax.random.uniform(ks[5], (NUM_CLASSES,), jnp.float32, -sh, sh),
    }


def pack_params(tp):
    """Convert PyTorch-layout params to the packed kernel layout."""
    p16 = jnp.zeros((_NUM_SMALL_ROWS, HIDDEN_DIM), jnp.float32)
    p16 = p16.at[_ROW_B0].set(tp["b0"])
    p16 = p16.at[_ROW_BH:_ROW_BH + NUM_LAYERS - 1].set(tp["bh"])
    p16 = p16.at[_ROW_GAMMA].set(tp["gamma"])
    p16 = p16.at[_ROW_BETA].set(tp["beta"])

    wo = jnp.zeros((HIDDEN_DIM, OUT_PAD), jnp.float32)
    wo = wo.at[:, :NUM_CLASSES].set(tp["Wo"].T)          # (in, out) zero-padded to 8
    bo = jnp.zeros((1, OUT_PAD), jnp.float32).at[0, :NUM_CLASSES].set(tp["bo"])

    return {
        "w0": tp["W0"].astype(jnp.bfloat16),             # (16, 768)   (out, in)
        "wh": tp["Wh"].astype(jnp.bfloat16),             # (6, 16, 16) (out, in)
        "wo": wo.astype(jnp.bfloat16),                   # (16, 8)     (in, out_padded)
        "p16": p16,                                      # (9, 16)     f32
        "bo": bo,                                        # (1, 8)      f32
    }


# ---------------------------------------------------------------------------
# Pure-JAX reference mirroring the PyTorch module (bf16 matmul operands).
# ---------------------------------------------------------------------------
def reference_forward(x_img, tp):
    def linear_bf16(x, Wt, bvec):
        return jnp.dot(x.astype(jnp.bfloat16), Wt.astype(jnp.bfloat16).T,
                       preferred_element_type=jnp.float32) + bvec

    def layernorm(h):
        mu = jnp.mean(h, axis=-1, keepdims=True)
        var = jnp.mean((h - mu) ** 2, axis=-1, keepdims=True)
        return (h - mu) / jnp.sqrt(var + LN_EPS) * tp["gamma"] + tp["beta"]

    h = x_img.reshape(x_img.shape[0], -1)
    h = jnp.maximum(layernorm(linear_bf16(h, tp["W0"], tp["b0"])), 0.0)
    for i in range(NUM_LAYERS - 1):
        h = jnp.maximum(layernorm(linear_bf16(h, tp["Wh"][i], tp["bh"][i])), 0.0)
    return linear_bf16(h, tp["Wo"], tp["bo"])


if __name__ == "__main__":
    key = jax.random.PRNGKey(0)
    k_x, k_p = jax.random.split(key)
    x_img = jax.random.normal(k_x, (BATCH, 3, H, W), jnp.float32)
    torch_params = init_torch_params(k_p)
    params = pack_params(torch_params)

    logits = mlp_classifier_deep_forward(x_img, params)
    logits = jax.block_until_ready(logits)

    ref = reference_forward(x_img, torch_params)
    assert logits.shape == (BATCH, NUM_CLASSES)
    max_err = jnp.max(jnp.abs(logits - ref))
    assert jnp.allclose(logits, ref, atol=2e-3, rtol=2e-3), f"max err {max_err}"

    print("KERNEL_OK")
</pallas_src>

<mosaic_0001>
module attributes {stable_mosaic.version = 11 : i64} {
  func.func @mlp_deep_kernel(%arg0: i32, %arg1: memref<2x768xf32, #tpu.memory_space<vmem>>, %arg2: memref<16x768xbf16, #tpu.memory_space<vmem>>, %arg3: memref<6x16x16xbf16, #tpu.memory_space<vmem>>, %arg4: memref<16x8xbf16, #tpu.memory_space<vmem>>, %arg5: memref<9x16xf32, #tpu.memory_space<vmem>>, %arg6: memref<1x8xf32, #tpu.memory_space<vmem>>, %arg7: memref<2x8xf32, #tpu.memory_space<vmem>>) attributes {dimension_semantics = [#tpu.dimension_semantics<parallel>], iteration_bounds = array<i64: 1>, scalar_prefetch = 0 : i64, scratch_operands = 0 : i64, tpu.core_type = #tpu.core_type<tc>, window_params = [{transform_indices = @transform_0, window_bounds = array<i64: 2, 768>}, {pipeline_mode = #tpu.pipeline_mode<synchronous>, transform_indices = @transform_1, window_bounds = array<i64: 16, 768>}, {pipeline_mode = #tpu.pipeline_mode<synchronous>, transform_indices = @transform_2, window_bounds = array<i64: 6, 16, 16>}, {pipeline_mode = #tpu.pipeline_mode<synchronous>, transform_indices = @transform_3, window_bounds = array<i64: 16, 8>}, {pipeline_mode = #tpu.pipeline_mode<synchronous>, transform_indices = @transform_4, window_bounds = array<i64: 9, 16>}, {pipeline_mode = #tpu.pipeline_mode<synchronous>, transform_indices = @transform_5, window_bounds = array<i64: 1, 8>}, {transform_indices = @transform_6, window_bounds = array<i64: 2, 8>}]} {
    %c7 = arith.constant 7 : index
    %c0 = arith.constant 0 : index
    %0 = vector.load %arg5[%c7, %c0] : memref<9x16xf32, #tpu.memory_space<vmem>>, vector<1x16xf32>
    %c8 = arith.constant 8 : index
    %c0_0 = arith.constant 0 : index
    %1 = vector.load %arg5[%c8, %c0_0] : memref<9x16xf32, #tpu.memory_space<vmem>>, vector<1x16xf32>
    %c0_1 = arith.constant 0 : index
    %c0_2 = arith.constant 0 : index
    %2 = vector.load %arg1[%c0_1, %c0_2] : memref<2x768xf32, #tpu.memory_space<vmem>>, vector<2x768xf32>
    %3 = arith.truncf %2 : vector<2x768xf32> to vector<2x768xbf16>
    %c0_3 = arith.constant 0 : index
    %c0_4 = arith.constant 0 : index
    %4 = vector.load %arg2[%c0_3, %c0_4] : memref<16x768xbf16, #tpu.memory_space<vmem>>, vector<16x768xbf16>
    %cst = arith.constant dense<0.000000e+00> : vector<2x16xf32>
    %5 = tpu.matmul %3, %4, %cst {dimension_numbers = #tpu.dot_dimension_numbers<[1], [1], [0], [0], [0, 0, 1, 0], [], []>} : vector<2x768xbf16>, vector<16x768xbf16>, vector<2x16xf32> -> vector<2x16xf32>
    %c0_5 = arith.constant 0 : index
    %c0_6 = arith.constant 0 : index
    %6 = vector.load %arg5[%c0_5, %c0_6] : memref<9x16xf32, #tpu.memory_space<vmem>>, vector<1x16xf32>
    %7 = vector.broadcast %6 : vector<1x16xf32> to vector<2x16xf32>
    %8 = arith.addf %5, %7 : vector<2x16xf32>
    %cst_7 = arith.constant dense<0.000000e+00> : vector<2xf32>
    %9 = vector.multi_reduction <add>, %8, %cst_7 [1] : vector<2x16xf32> to vector<2xf32>
    %10 = vector.shape_cast %9 : vector<2xf32> to vector<2x1xf32>
    %11 = arith.mulf %8, %8 : vector<2x16xf32>
    %cst_8 = arith.constant dense<0.000000e+00> : vector<2xf32>
    %12 = vector.multi_reduction <add>, %11, %cst_8 [1] : vector<2x16xf32> to vector<2xf32>
    %13 = vector.shape_cast %12 : vector<2xf32> to vector<2x1xf32>
    %cst_9 = arith.constant 6.250000e-02 : f32
    %14 = vector.broadcast %cst_9 : f32 to vector<2x1xf32>
    %15 = arith.mulf %10, %14 : vector<2x1xf32>
    %cst_10 = arith.constant 6.250000e-02 : f32
    %16 = vector.broadcast %cst_10 : f32 to vector<2x1xf32>
    %17 = arith.mulf %13, %16 : vector<2x1xf32>
    %18 = arith.mulf %15, %15 : vector<2x1xf32>
    %19 = arith.subf %17, %18 : vector<2x1xf32>
    %cst_11 = arith.constant 0.000000e+00 : f32
    %20 = vector.broadcast %cst_11 : f32 to vector<2x1xf32>
    %21 = arith.maximumf %19, %20 : vector<2x1xf32>
    %22 = vector.broadcast %15 : vector<2x1xf32> to vector<2x16xf32>
    %23 = arith.subf %8, %22 : vector<2x16xf32>
    %cst_12 = arith.constant 9.99999974E-6 : f32
    %24 = vector.broadcast %cst_12 : f32 to vector<2x1xf32>
    %25 = arith.addf %21, %24 : vector<2x1xf32>
    %26 = math.rsqrt %25 : vector<2x1xf32>
    %27 = vector.broadcast %26 : vector<2x1xf32> to vector<2x16xf32>
    %28 = arith.mulf %23, %27 : vector<2x16xf32>
    %29 = vector.broadcast %0 : vector<1x16xf32> to vector<2x16xf32>
    %30 = arith.mulf %28, %29 : vector<2x16xf32>
    %31 = vector.broadcast %1 : vector<1x16xf32> to vector<2x16xf32>
    %32 = arith.addf %30, %31 : vector<2x16xf32>
    %cst_13 = arith.constant 0.000000e+00 : f32
    %33 = vector.broadcast %cst_13 : f32 to vector<2x16xf32>
    %34 = arith.maximumf %32, %33 : vector<2x16xf32>
    %35 = arith.truncf %34 : vector<2x16xf32> to vector<2x16xbf16>
    %c0_14 = arith.constant 0 : index
    %c0_15 = arith.constant 0 : index
    %c0_16 = arith.constant 0 : index
    %36 = vector.load %arg3[%c0_14, %c0_15, %c0_16] : memref<6x16x16xbf16, #tpu.memory_space<vmem>>, vector<1x16x16xbf16>
    %37 = vector.shape_cast %36 : vector<1x16x16xbf16> to vector<16x16xbf16>
    %cst_17 = arith.constant dense<0.000000e+00> : vector<2x16xf32>
    %38 = tpu.matmul %35, %37, %cst_17 {dimension_numbers = #tpu.dot_dimension_numbers<[1], [1], [0], [0], [0, 0, 1, 0], [], []>} : vector<2x16xbf16>, vector<16x16xbf16>, vector<2x16xf32> -> vector<2x16xf32>
    %c1 = arith.constant 1 : index
    %c0_18 = arith.constant 0 : index
    %39 = vector.load %arg5[%c1, %c0_18] : memref<9x16xf32, #tpu.memory_space<vmem>>, vector<1x16xf32>
    %40 = vector.broadcast %39 : vector<1x16xf32> to vector<2x16xf32>
    %41 = arith.addf %38, %40 : vector<2x16xf32>
    %cst_19 = arith.constant dense<0.000000e+00> : vector<2xf32>
    %42 = vector.multi_reduction <add>, %41, %cst_19 [1] : vector<2x16xf32> to vector<2xf32>
    %43 = vector.shape_cast %42 : vector<2xf32> to vector<2x1xf32>
    %44 = arith.mulf %41, %41 : vector<2x16xf32>
    %cst_20 = arith.constant dense<0.000000e+00> : vector<2xf32>
    %45 = vector.multi_reduction <add>, %44, %cst_20 [1] : vector<2x16xf32> to vector<2xf32>
    %46 = vector.shape_cast %45 : vector<2xf32> to vector<2x1xf32>
    %cst_21 = arith.constant 6.250000e-02 : f32
    %47 = vector.broadcast %cst_21 : f32 to vector<2x1xf32>
    %48 = arith.mulf %43, %47 : vector<2x1xf32>
    %cst_22 = arith.constant 6.250000e-02 : f32
    %49 = vector.broadcast %cst_22 : f32 to vector<2x1xf32>
    %50 = arith.mulf %46, %49 : vector<2x1xf32>
    %51 = arith.mulf %48, %48 : vector<2x1xf32>
    %52 = arith.subf %50, %51 : vector<2x1xf32>
    %cst_23 = arith.constant 0.000000e+00 : f32
    %53 = vector.broadcast %cst_23 : f32 to vector<2x1xf32>
    %54 = arith.maximumf %52, %53 : vector<2x1xf32>
    %55 = vector.broadcast %48 : vector<2x1xf32> to vector<2x16xf32>
    %56 = arith.subf %41, %55 : vector<2x16xf32>
    %cst_24 = arith.constant 9.99999974E-6 : f32
    %57 = vector.broadcast %cst_24 : f32 to vector<2x1xf32>
    %58 = arith.addf %54, %57 : vector<2x1xf32>
    %59 = math.rsqrt %58 : vector<2x1xf32>
    %60 = vector.broadcast %59 : vector<2x1xf32> to vector<2x16xf32>
    %61 = arith.mulf %56, %60 : vector<2x16xf32>
    %62 = vector.broadcast %0 : vector<1x16xf32> to vector<2x16xf32>
    %63 = arith.mulf %61, %62 : vector<2x16xf32>
    %64 = vector.broadcast %1 : vector<1x16xf32> to vector<2x16xf32>
    %65 = arith.addf %63, %64 : vector<2x16xf32>
    %cst_25 = arith.constant 0.000000e+00 : f32
    %66 = vector.broadcast %cst_25 : f32 to vector<2x16xf32>
    %67 = arith.maximumf %65, %66 : vector<2x16xf32>
    %68 = arith.truncf %67 : vector<2x16xf32> to vector<2x16xbf16>
    %c1_26 = arith.constant 1 : index
    %c0_27 = arith.constant 0 : index
    %c0_28 = arith.constant 0 : index
    %69 = vector.load %arg3[%c1_26, %c0_27, %c0_28] : memref<6x16x16xbf16, #tpu.memory_space<vmem>>, vector<1x16x16xbf16>
    %70 = vector.shape_cast %69 : vector<1x16x16xbf16> to vector<16x16xbf16>
    %cst_29 = arith.constant dense<0.000000e+00> : vector<2x16xf32>
    %71 = tpu.matmul %68, %70, %cst_29 {dimension_numbers = #tpu.dot_dimension_numbers<[1], [1], [0], [0], [0, 0, 1, 0], [], []>} : vector<2x16xbf16>, vector<16x16xbf16>, vector<2x16xf32> -> vector<2x16xf32>
    %c2 = arith.constant 2 : index
    %c0_30 = arith.constant 0 : index
    %72 = vector.load %arg5[%c2, %c0_30] : memref<9x16xf32, #tpu.memory_space<vmem>>, vector<1x16xf32>
    %73 = vector.broadcast %72 : vector<1x16xf32> to vector<2x16xf32>
    %74 = arith.addf %71, %73 : vector<2x16xf32>
    %cst_31 = arith.constant dense<0.000000e+00> : vector<2xf32>
    %75 = vector.multi_reduction <add>, %74, %cst_31 [1] : vector<2x16xf32> to vector<2xf32>
    %76 = vector.shape_cast %75 : vector<2xf32> to vector<2x1xf32>
    %77 = arith.mulf %74, %74 : vector<2x16xf32>
    %cst_32 = arith.constant dense<0.000000e+00> : vector<2xf32>
    %78 = vector.multi_reduction <add>, %77, %cst_32 [1] : vector<2x16xf32> to vector<2xf32>
    %79 = vector.shape_cast %78 : vector<2xf32> to vector<2x1xf32>
    %cst_33 = arith.constant 6.250000e-02 : f32
    %80 = vector.broadcast %cst_33 : f32 to vector<2x1xf32>
    %81 = arith.mulf %76, %80 : vector<2x1xf32>
    %cst_34 = arith.constant 6.250000e-02 : f32
    %82 = vector.broadcast %cst_34 : f32 to vector<2x1xf32>
    %83 = arith.mulf %79, %82 : vector<2x1xf32>
    %84 = arith.mulf %81, %81 : vector<2x1xf32>
    %85 = arith.subf %83, %84 : vector<2x1xf32>
    %cst_35 = arith.constant 0.000000e+00 : f32
    %86 = vector.broadcast %cst_35 : f32 to vector<2x1xf32>
    %87 = arith.maximumf %85, %86 : vector<2x1xf32>
    %88 = vector.broadcast %81 : vector<2x1xf32> to vector<2x16xf32>
    %89 = arith.subf %74, %88 : vector<2x16xf32>
    %cst_36 = arith.constant 9.99999974E-6 : f32
    %90 = vector.broadcast %cst_36 : f32 to vector<2x1xf32>
    %91 = arith.addf %87, %90 : vector<2x1xf32>
    %92 = math.rsqrt %91 : vector<2x1xf32>
    %93 = vector.broadcast %92 : vector<2x1xf32> to vector<2x16xf32>
    %94 = arith.mulf %89, %93 : vector<2x16xf32>
    %95 = vector.broadcast %0 : vector<1x16xf32> to vector<2x16xf32>
    %96 = arith.mulf %94, %95 : vector<2x16xf32>
    %97 = vector.broadcast %1 : vector<1x16xf32> to vector<2x16xf32>
    %98 = arith.addf %96, %97 : vector<2x16xf32>
    %cst_37 = arith.constant 0.000000e+00 : f32
    %99 = vector.broadcast %cst_37 : f32 to vector<2x16xf32>
    %100 = arith.maximumf %98, %99 : vector<2x16xf32>
    %101 = arith.truncf %100 : vector<2x16xf32> to vector<2x16xbf16>
    %c2_38 = arith.constant 2 : index
    %c0_39 = arith.constant 0 : index
    %c0_40 = arith.constant 0 : index
    %102 = vector.load %arg3[%c2_38, %c0_39, %c0_40] : memref<6x16x16xbf16, #tpu.memory_space<vmem>>, vector<1x16x16xbf16>
    %103 = vector.shape_cast %102 : vector<1x16x16xbf16> to vector<16x16xbf16>
    %cst_41 = arith.constant dense<0.000000e+00> : vector<2x16xf32>
    %104 = tpu.matmul %101, %103, %cst_41 {dimension_numbers = #tpu.dot_dimension_numbers<[1], [1], [0], [0], [0, 0, 1, 0], [], []>} : vector<2x16xbf16>, vector<16x16xbf16>, vector<2x16xf32> -> vector<2x16xf32>
    %c3 = arith.constant 3 : index
    %c0_42 = arith.constant 0 : index
    %105 = vector.load %arg5[%c3, %c0_42] : memref<9x16xf32, #tpu.memory_space<vmem>>, vector<1x16xf32>
    %106 = vector.broadcast %105 : vector<1x16xf32> to vector<2x16xf32>
    %107 = arith.addf %104, %106 : vector<2x16xf32>
    %cst_43 = arith.constant dense<0.000000e+00> : vector<2xf32>
    %108 = vector.multi_reduction <add>, %107, %cst_43 [1] : vector<2x16xf32> to vector<2xf32>
    %109 = vector.shape_cast %108 : vector<2xf32> to vector<2x1xf32>
    %110 = arith.mulf %107, %107 : vector<2x16xf32>
    %cst_44 = arith.constant dense<0.000000e+00> : vector<2xf32>
    %111 = vector.multi_reduction <add>, %110, %cst_44 [1] : vector<2x16xf32> to vector<2xf32>
    %112 = vector.shape_cast %111 : vector<2xf32> to vector<2x1xf32>
    %cst_45 = arith.constant 6.250000e-02 : f32
    %113 = vector.broadcast %cst_45 : f32 to vector<2x1xf32>
    %114 = arith.mulf %109, %113 : vector<2x1xf32>
    %cst_46 = arith.constant 6.250000e-02 : f32
    %115 = vector.broadcast %cst_46 : f32 to vector<2x1xf32>
    %116 = arith.mulf %112, %115 : vector<2x1xf32>
    %117 = arith.mulf %114, %114 : vector<2x1xf32>
    %118 = arith.subf %116, %117 : vector<2x1xf32>
    %cst_47 = arith.constant 0.000000e+00 : f32
    %119 = vector.broadcast %cst_47 : f32 to vector<2x1xf32>
    %120 = arith.maximumf %118, %119 : vector<2x1xf32>
    %121 = vector.broadcast %114 : vector<2x1xf32> to vector<2x16xf32>
    %122 = arith.subf %107, %121 : vector<2x16xf32>
    %cst_48 = arith.constant 9.99999974E-6 : f32
    %123 = vector.broadcast %cst_48 : f32 to vector<2x1xf32>
    %124 = arith.addf %120, %123 : vector<2x1xf32>
    %125 = math.rsqrt %124 : vector<2x1xf32>
    %126 = vector.broadcast %125 : vector<2x1xf32> to vector<2x16xf32>
    %127 = arith.mulf %122, %126 : vector<2x16xf32>
    %128 = vector.broadcast %0 : vector<1x16xf32> to vector<2x16xf32>
    %129 = arith.mulf %127, %128 : vector<2x16xf32>
    %130 = vector.broadcast %1 : vector<1x16xf32> to vector<2x16xf32>
    %131 = arith.addf %129, %130 : vector<2x16xf32>
    %cst_49 = arith.constant 0.000000e+00 : f32
    %132 = vector.broadcast %cst_49 : f32 to vector<2x16xf32>
    %133 = arith.maximumf %131, %132 : vector<2x16xf32>
    %134 = arith.truncf %133 : vector<2x16xf32> to vector<2x16xbf16>
    %c3_50 = arith.constant 3 : index
    %c0_51 = arith.constant 0 : index
    %c0_52 = arith.constant 0 : index
    %135 = vector.load %arg3[%c3_50, %c0_51, %c0_52] : memref<6x16x16xbf16, #tpu.memory_space<vmem>>, vector<1x16x16xbf16>
    %136 = vector.shape_cast %135 : vector<1x16x16xbf16> to vector<16x16xbf16>
    %cst_53 = arith.constant dense<0.000000e+00> : vector<2x16xf32>
    %137 = tpu.matmul %134, %136, %cst_53 {dimension_numbers = #tpu.dot_dimension_numbers<[1], [1], [0], [0], [0, 0, 1, 0], [], []>} : vector<2x16xbf16>, vector<16x16xbf16>, vector<2x16xf32> -> vector<2x16xf32>
    %c4 = arith.constant 4 : index
    %c0_54 = arith.constant 0 : index
    %138 = vector.load %arg5[%c4, %c0_54] : memref<9x16xf32, #tpu.memory_space<vmem>>, vector<1x16xf32>
    %139 = vector.broadcast %138 : vector<1x16xf32> to vector<2x16xf32>
    %140 = arith.addf %137, %139 : vector<2x16xf32>
    %cst_55 = arith.constant dense<0.000000e+00> : vector<2xf32>
    %141 = vector.multi_reduction <add>, %140, %cst_55 [1] : vector<2x16xf32> to vector<2xf32>
    %142 = vector.shape_cast %141 : vector<2xf32> to vector<2x1xf32>
    %143 = arith.mulf %140, %140 : vector<2x16xf32>
    %cst_56 = arith.constant dense<0.000000e+00> : vector<2xf32>
    %144 = vector.multi_reduction <add>, %143, %cst_56 [1] : vector<2x16xf32> to vector<2xf32>
    %145 = vector.shape_cast %144 : vector<2xf32> to vector<2x1xf32>
    %cst_57 = arith.constant 6.250000e-02 : f32
    %146 = vector.broadcast %cst_57 : f32 to vector<2x1xf32>
    %147 = arith.mulf %142, %146 : vector<2x1xf32>
    %cst_58 = arith.constant 6.250000e-02 : f32
    %148 = vector.broadcast %cst_58 : f32 to vector<2x1xf32>
    %149 = arith.mulf %145, %148 : vector<2x1xf32>
    %150 = arith.mulf %147, %147 : vector<2x1xf32>
    %151 = arith.subf %149, %150 : vector<2x1xf32>
    %cst_59 = arith.constant 0.000000e+00 : f32
    %152 = vector.broadcast %cst_59 : f32 to vector<2x1xf32>
    %153 = arith.maximumf %151, %152 : vector<2x1xf32>
    %154 = vector.broadcast %147 : vector<2x1xf32> to vector<2x16xf32>
    %155 = arith.subf %140, %154 : vector<2x16xf32>
    %cst_60 = arith.constant 9.99999974E-6 : f32
    %156 = vector.broadcast %cst_60 : f32 to vector<2x1xf32>
    %157 = arith.addf %153, %156 : vector<2x1xf32>
    %158 = math.rsqrt %157 : vector<2x1xf32>
    %159 = vector.broadcast %158 : vector<2x1xf32> to vector<2x16xf32>
    %160 = arith.mulf %155, %159 : vector<2x16xf32>
    %161 = vector.broadcast %0 : vector<1x16xf32> to vector<2x16xf32>
    %162 = arith.mulf %160, %161 : vector<2x16xf32>
    %163 = vector.broadcast %1 : vector<1x16xf32> to vector<2x16xf32>
    %164 = arith.addf %162, %163 : vector<2x16xf32>
    %cst_61 = arith.constant 0.000000e+00 : f32
    %165 = vector.broadcast %cst_61 : f32 to vector<2x16xf32>
    %166 = arith.maximumf %164, %165 : vector<2x16xf32>
    %167 = arith.truncf %166 : vector<2x16xf32> to vector<2x16xbf16>
    %c4_62 = arith.constant 4 : index
    %c0_63 = arith.constant 0 : index
    %c0_64 = arith.constant 0 : index
    %168 = vector.load %arg3[%c4_62, %c0_63, %c0_64] : memref<6x16x16xbf16, #tpu.memory_space<vmem>>, vector<1x16x16xbf16>
    %169 = vector.shape_cast %168 : vector<1x16x16xbf16> to vector<16x16xbf16>
    %cst_65 = arith.constant dense<0.000000e+00> : vector<2x16xf32>
    %170 = tpu.matmul %167, %169, %cst_65 {dimension_numbers = #tpu.dot_dimension_numbers<[1], [1], [0], [0], [0, 0, 1, 0], [], []>} : vector<2x16xbf16>, vector<16x16xbf16>, vector<2x16xf32> -> vector<2x16xf32>
    %c5 = arith.constant 5 : index
    %c0_66 = arith.constant 0 : index
    %171 = vector.load %arg5[%c5, %c0_66] : memref<9x16xf32, #tpu.memory_space<vmem>>, vector<1x16xf32>
    %172 = vector.broadcast %171 : vector<1x16xf32> to vector<2x16xf32>
    %173 = arith.addf %170, %172 : vector<2x16xf32>
    %cst_67 = arith.constant dense<0.000000e+00> : vector<2xf32>
    %174 = vector.multi_reduction <add>, %173, %cst_67 [1] : vector<2x16xf32> to vector<2xf32>
    %175 = vector.shape_cast %174 : vector<2xf32> to vector<2x1xf32>
    %176 = arith.mulf %173, %173 : vector<2x16xf32>
    %cst_68 = arith.constant dense<0.000000e+00> : vector<2xf32>
    %177 = vector.multi_reduction <add>, %176, %cst_68 [1] : vector<2x16xf32> to vector<2xf32>
    %178 = vector.shape_cast %177 : vector<2xf32> to vector<2x1xf32>
    %cst_69 = arith.constant 6.250000e-02 : f32
    %179 = vector.broadcast %cst_69 : f32 to vector<2x1xf32>
    %180 = arith.mulf %175, %179 : vector<2x1xf32>
    %cst_70 = arith.constant 6.250000e-02 : f32
    %181 = vector.broadcast %cst_70 : f32 to vector<2x1xf32>
    %182 = arith.mulf %178, %181 : vector<2x1xf32>
    %183 = arith.mulf %180, %180 : vector<2x1xf32>
    %184 = arith.subf %182, %183 : vector<2x1xf32>
    %cst_71 = arith.constant 0.000000e+00 : f32
    %185 = vector.broadcast %cst_71 : f32 to vector<2x1xf32>
    %186 = arith.maximumf %184, %185 : vector<2x1xf32>
    %187 = vector.broadcast %180 : vector<2x1xf32> to vector<2x16xf32>
    %188 = arith.subf %173, %187 : vector<2x16xf32>
    %cst_72 = arith.constant 9.99999974E-6 : f32
    %189 = vector.broadcast %cst_72 : f32 to vector<2x1xf32>
    %190 = arith.addf %186, %189 : vector<2x1xf32>
    %191 = math.rsqrt %190 : vector<2x1xf32>
    %192 = vector.broadcast %191 : vector<2x1xf32> to vector<2x16xf32>
    %193 = arith.mulf %188, %192 : vector<2x16xf32>
    %194 = vector.broadcast %0 : vector<1x16xf32> to vector<2x16xf32>
    %195 = arith.mulf %193, %194 : vector<2x16xf32>
    %196 = vector.broadcast %1 : vector<1x16xf32> to vector<2x16xf32>
    %197 = arith.addf %195, %196 : vector<2x16xf32>
    %cst_73 = arith.constant 0.000000e+00 : f32
    %198 = vector.broadcast %cst_73 : f32 to vector<2x16xf32>
    %199 = arith.maximumf %197, %198 : vector<2x16xf32>
    %200 = arith.truncf %199 : vector<2x16xf32> to vector<2x16xbf16>
    %c5_74 = arith.constant 5 : index
    %c0_75 = arith.constant 0 : index
    %c0_76 = arith.constant 0 : index
    %201 = vector.load %arg3[%c5_74, %c0_75, %c0_76] : memref<6x16x16xbf16, #tpu.memory_space<vmem>>, vector<1x16x16xbf16>
    %202 = vector.shape_cast %201 : vector<1x16x16xbf16> to vector<16x16xbf16>
    %cst_77 = arith.constant dense<0.000000e+00> : vector<2x16xf32>
    %203 = tpu.matmul %200, %202, %cst_77 {dimension_numbers = #tpu.dot_dimension_numbers<[1], [1], [0], [0], [0, 0, 1, 0], [], []>} : vector<2x16xbf16>, vector<16x16xbf16>, vector<2x16xf32> -> vector<2x16xf32>
    %c6 = arith.constant 6 : index
    %c0_78 = arith.constant 0 : index
    %204 = vector.load %arg5[%c6, %c0_78] : memref<9x16xf32, #tpu.memory_space<vmem>>, vector<1x16xf32>
    %205 = vector.broadcast %204 : vector<1x16xf32> to vector<2x16xf32>
    %206 = arith.addf %203, %205 : vector<2x16xf32>
    %cst_79 = arith.constant dense<0.000000e+00> : vector<2xf32>
    %207 = vector.multi_reduction <add>, %206, %cst_79 [1] : vector<2x16xf32> to vector<2xf32>
    %208 = vector.shape_cast %207 : vector<2xf32> to vector<2x1xf32>
    %209 = arith.mulf %206, %206 : vector<2x16xf32>
    %cst_80 = arith.constant dense<0.000000e+00> : vector<2xf32>
    %210 = vector.multi_reduction <add>, %209, %cst_80 [1] : vector<2x16xf32> to vector<2xf32>
    %211 = vector.shape_cast %210 : vector<2xf32> to vector<2x1xf32>
    %cst_81 = arith.constant 6.250000e-02 : f32
    %212 = vector.broadcast %cst_81 : f32 to vector<2x1xf32>
    %213 = arith.mulf %208, %212 : vector<2x1xf32>
    %cst_82 = arith.constant 6.250000e-02 : f32
    %214 = vector.broadcast %cst_82 : f32 to vector<2x1xf32>
    %215 = arith.mulf %211, %214 : vector<2x1xf32>
    %216 = arith.mulf %213, %213 : vector<2x1xf32>
    %217 = arith.subf %215, %216 : vector<2x1xf32>
    %cst_83 = arith.constant 0.000000e+00 : f32
    %218 = vector.broadcast %cst_83 : f32 to vector<2x1xf32>
    %219 = arith.maximumf %217, %218 : vector<2x1xf32>
    %220 = vector.broadcast %213 : vector<2x1xf32> to vector<2x16xf32>
    %221 = arith.subf %206, %220 : vector<2x16xf32>
    %cst_84 = arith.constant 9.99999974E-6 : f32
    %222 = vector.broadcast %cst_84 : f32 to vector<2x1xf32>
    %223 = arith.addf %219, %222 : vector<2x1xf32>
    %224 = math.rsqrt %223 : vector<2x1xf32>
    %225 = vector.broadcast %224 : vector<2x1xf32> to vector<2x16xf32>
    %226 = arith.mulf %221, %225 : vector<2x16xf32>
    %227 = vector.broadcast %0 : vector<1x16xf32> to vector<2x16xf32>
    %228 = arith.mulf %226, %227 : vector<2x16xf32>
    %229 = vector.broadcast %1 : vector<1x16xf32> to vector<2x16xf32>
    %230 = arith.addf %228, %229 : vector<2x16xf32>
    %cst_85 = arith.constant 0.000000e+00 : f32
    %231 = vector.broadcast %cst_85 : f32 to vector<2x16xf32>
    %232 = arith.maximumf %230, %231 : vector<2x16xf32>
    %233 = arith.truncf %232 : vector<2x16xf32> to vector<2x16xbf16>
    %c0_86 = arith.constant 0 : index
    %c0_87 = arith.constant 0 : index
    %234 = vector.load %arg4[%c0_86, %c0_87] : memref<16x8xbf16, #tpu.memory_space<vmem>>, vector<16x8xbf16>
    %cst_88 = arith.constant dense<0.000000e+00> : vector<2x8xf32>
    %235 = tpu.matmul %233, %234, %cst_88 {dimension_numbers = #tpu.dot_dimension_numbers<[1], [0], [0], [1], [0, 0, 1, 1], [], []>} : vector<2x16xbf16>, vector<16x8xbf16>, vector<2x8xf32> -> vector<2x8xf32>
    %c0_89 = arith.constant 0 : index
    %c0_90 = arith.constant 0 : index
    %236 = vector.load %arg6[%c0_89, %c0_90] : memref<1x8xf32, #tpu.memory_space<vmem>>, vector<1x8xf32>
    %237 = vector.broadcast %236 : vector<1x8xf32> to vector<2x8xf32>
    %238 = arith.addf %235, %237 : vector<2x8xf32>
    %c0_91 = arith.constant 0 : index
    %c0_92 = arith.constant 0 : index
    %239 = vector.load %arg7[%c0_91, %c0_92] : memref<2x8xf32, #tpu.memory_space<vmem>>, vector<2x8xf32>
    tpu.vector_store %arg7[%c0_91, %c0_92], %238 {strides = array<i32>} : memref<2x8xf32, #tpu.memory_space<vmem>>, vector<2x8xf32>,
    return
  }
  func.func @transform_0(%arg0: i32) -> (i32, i32) {
    %c0_i32 = arith.constant 0 : i32
    %c0_i32_0 = arith.constant 0 : i32
    return %arg0, %c0_i32 : i32, i32
  }
  func.func @transform_1(%arg0: i32) -> (i32, i32) {
    %c0_i32 = arith.constant 0 : i32
    %c0_i32_0 = arith.constant 0 : i32
    %c0_i32_1 = arith.constant 0 : i32
    return %c0_i32, %c0_i32_0 : i32, i32
  }
  func.func @transform_2(%arg0: i32) -> (i32, i32, i32) {
    %c0_i32 = arith.constant 0 : i32
    %c0_i32_0 = arith.constant 0 : i32
    %c0_i32_1 = arith.constant 0 : i32
    %c0_i32_2 = arith.constant 0 : i32
    return %c0_i32, %c0_i32_0, %c0_i32_1 : i32, i32, i32
  }
  func.func @transform_3(%arg0: i32) -> (i32, i32) {
    %c0_i32 = arith.constant 0 : i32
    %c0_i32_0 = arith.constant 0 : i32
    %c0_i32_1 = arith.constant 0 : i32
    return %c0_i32, %c0_i32_0 : i32, i32
  }
  func.func @transform_4(%arg0: i32) -> (i32, i32) {
    %c0_i32 = arith.constant 0 : i32
    %c0_i32_0 = arith.constant 0 : i32
    %c0_i32_1 = arith.constant 0 : i32
    return %c0_i32, %c0_i32_0 : i32, i32
  }
  func.func @transform_5(%arg0: i32) -> (i32, i32) {
    %c0_i32 = arith.constant 0 : i32
    %c0_i32_0 = arith.constant 0 : i32
    %c0_i32_1 = arith.constant 0 : i32
    return %c0_i32, %c0_i32_0 : i32, i32
  }
  func.func @transform_6(%arg0: i32) -> (i32, i32) {
    %c0_i32 = arith.constant 0 : i32
    %c0_i32_0 = arith.constant 0 : i32
    return %arg0, %c0_i32 : i32, i32
  }
}

</mosaic_0001>

<bundles_post_ra>
// kernel: mlp_classifier_deep_forward.1
= control target key start
LH: loop header
LB: loop body
LE: loop exit
PB: predicated region body
PF: predicated region fallthrough
CT: control target
= control target key end

     0   :  { %s904_s0 = inlined_call_operand.vmem [shape: f32[2,768], index: 0, kind: input, shape index: {}]   ;;  %s905_s1 = inlined_call_operand.vmem [shape: bf16[16,768], index: 1, kind: input, shape index: {}]   ;;  %s906_s2 = inlined_call_operand.vmem [shape: bf16[6,16,16], index: 2, kind: input, shape index: {}]   ;;  %s907_s3 = inlined_call_operand.vmem [shape: bf16[16,8], index: 3, kind: input, shape index: {}]   ;;  %s908_s4 = inlined_call_operand.vmem [shape: f32[9,16], index: 4, kind: input, shape index: {}]   ;;  %s909_s5 = inlined_call_operand.vmem [shape: f32[1,8], index: 5, kind: input, shape index: {}]   ;;  %s910_s6 = inlined_call_operand.hbm [shape: f32[2,8], index: 6, kind: output, shape index: {}]  }
   0x1   :  { %v596_v0 = vld [vmem:[%s905_s1] sm:$0xf]  ;;  %v666_v1 = vld [vmem:[%s905_s1 + $0x14] sm:$0xf0]  ;;  %v663_v2 = vld [vmem:[%s905_s1 + $0x4] sm:$0xf] }
   0x2   :  { %v597_v3 = vor.u32 %v666_v1, %v596_v0  ;;  %v598_v4 = vld [vmem:[%s905_s1 + $0x18] sm:$0xf0]  ;;  %v604_v5 = vld [vmem:[%s905_s1 + $0x8] sm:$0xf]  ;;  %v667_v6 = vld [vmem:[%s905_s1 + $0x1c] sm:$0xf0] }
   0x3   :  { %v601_v7 = vor.u32 %v663_v2, %v598_v4  ;;  %v605_v8 = vor.u32 %v667_v6, %v604_v5  ;;  %v664_v9 = vld [vmem:[%s905_s1 + $0xc] sm:$0xf]  ;;  %v606_v10 = vld [vmem:[%s905_s1 + $0x20] sm:$0xf0]  ;;  %v612_v13 = vld [vmem:[%s905_s1 + $0x10] sm:$0xf] }
   0x4   :  { %v27_v11 = vld [vmem:[%s904_s0] sm:$0xff]  ;;  %97 = vmatpush.bf16.xpose.msra.mxu0 %v597_v3  ;;  %v609_v12 = vor.u32 %v664_v9, %v606_v10  ;;  %v668_v14 = vld [vmem:[%s905_s1 + $0x24] sm:$0xf0]  ;;  %v665_v16 = vld [vmem:[%s905_s1 + $0x14] sm:$0xf] }
   0x5   :  { %31 = vst [vmem:[#allocation1] ss:$4 sm:$0xff] %v27_v11  ;;  %110 = vmatpush.bf16.xpose.msra.mxu1 %v601_v7  ;;  %123 = vmatpush.bf16.xpose.msra.mxu2 %v605_v8  ;;  %v613_v15 = vor.u32 %v668_v14, %v612_v13  ;;  %v614_v17 = vld [vmem:[%s905_s1 + $0x28] sm:$0xf0]  ;;  %v28_v18 = vld [vmem:[%s904_s0 + $0x8] sm:$0xf] }
   0x6   :  { %136 = vmatpush.bf16.xpose.msra.mxu3 %v609_v12  ;;  %v617_v19 = vor.u32 %v665_v16, %v614_v17  ;;  %33 = vst [vmem:[#allocation1 + $0x20] ss:$4 sm:$0xff] %v28_v18 }
   0xc   :  { %149 = vmatpush.bf16.xpose.msrb.mxu0 %v613_v15 }
   0xd   :  { %162 = vmatpush.bf16.xpose.msrb.mxu1 %v617_v19 }
   0xe   :  { %11 = vsyncpa [#allocation3], 0  ;;  %v34_v20 = vld.sshfl [vmem:[#allocation1] sm:$0xff pattern:$0x73625140]  ;;  %vm168_vm0 = vcmask 123904  }
   0xf   :  { %v35_v21 = vld.sshfl [vmem:[#allocation1 + $0x8] sm:$0xff pattern:$0x73625140]  ;;  %v46_v22 = vpack.c.bf16 %v34_v20, %v34_v20  ;;  %v36_v24 = vld.sshfl [vmem:[#allocation1 + $0x10] sm:$0xff pattern:$0x73625140] }
  0x10   :  { %v47_v23 = vpack.c.bf16 %v35_v21, %v35_v21  ;;  %v37_v25 = vld.sshfl [vmem:[#allocation1 + $0x18] sm:$0xff pattern:$0x73625140]  ;;  %v48_v26 = vpack.c.bf16 %v36_v24, %v36_v24  ;;  %v38_v28 = vld.sshfl [vmem:[#allocation1 + $0x20] sm:$0xff pattern:$0x73625140] }
  0x11   :  { %v49_v27 = vpack.c.bf16 %v37_v25, %v37_v25  ;;  %98 = vmatmul.bf16.vlgmr.msra.gmra.mxu0 %v46_v22  ;;  %v39_v29 = vld.sshfl [vmem:[#allocation1 + $0x28] sm:$0xff pattern:$0x73625140]  ;;  %v50_v30 = vpack.c.bf16 %v38_v28, %v38_v28  ;;  %v677_v34 = vld [vmem:[%s908_s4] ss:$0 sm:$0xff]  ;;  %vm209_vm1 = vcmask 130048  }
  0x12   :  { %111 = vmatmul.bf16.vlgmr.msra.gmra.mxu1 %v47_v23  ;;  %124 = vmatmul.bf16.vlgmr.msra.gmra.mxu2 %v48_v26  ;;  %v51_v31 = vpack.c.bf16 %v39_v29, %v39_v29  ;;  %v669_v55 = vld [vmem:[%s906_s2] sm:$0xff]  ;;  %v822_v10 = vld [vmem:[%s908_s4 + $0x8] ss:$0 sm:$0xff]  ;;  %s727_s28 = smov [#allocation2]   ;;  %s585_s8 = sshll.u32 %s910_s6, 4  ;;  %s586_s8 = int_to_ptr.hbm [resolvable:$true] %s585_s8 }
  0x13   :  { %137 = vmatmul.bf16.vlgmr.msra.gmra.mxu3 %v49_v27  ;;  %v214_v57 = vsel %vm209_vm1, %v669_v55, 0  ;;  %v817_v7 = vld [vmem:[%s908_s4 + $0x7] ss:$0 sm:$0xff]  ;;  %v680_v15 = vld [vmem:[%s908_s4 + $0x1] ss:$0 sm:$0xff]  ;;  %v670_v23 = vld [vmem:[%s906_s2 + $0x8] sm:$0xff] }
  0x14   :  { %223 = vmatpush.bf16.xpose.msrb.mxu2 %v214_v57  ;;  %v272_v25 = vsel %vm209_vm1, %v670_v23, 0  ;;  %s583_s29 = sshll.u32 %s727_s28, 4  ;;  %s584_s29 = int_to_ptr.vmem [resolvable:$true] %s583_s29 }
  0x15   :  { %281 = vmatpush.bf16.xpose.msrb.mxu3 %v272_v25 }
  0x21   :  { %150 = vmatmul.bf16.vlgmr.msrb.gmra.mxu0 %v50_v30 }
  0x22   :  { %163 = vmatmul.bf16.vlgmr.msrb.gmra.mxu1 %v51_v31 }
  0x8e   :  { %v99_v32 = vpop.f32.mrf.mxu0 }
  0x8f   :  { %v112_v33 = vpop.f32.mrf.mxu1  ;;  %v100_v35 = vadd.f32 %v677_v34, %v99_v32 }
  0x91   :  { %v113_v40 = vadd.f32 %v112_v33, %v100_v35 }
  0x95   :  { %v125_v36 = vpop.f32.mrf.mxu2 }
  0x96   :  { %v138_v37 = vpop.f32.mrf.mxu3  ;;  %v101_v38 = vpop.f32.mrf.mxu0  ;;  %v126_v41 = vadd.f32 %v125_v36, %v113_v40 }
  0x97   :  { %v114_v39 = vpop.f32.mrf.mxu1 }
  0x98   :  { %v139_v42 = vadd.f32 %v138_v37, %v126_v41 }
  0x9d   :  { %v127_v43 = vpop.f32.mrf.mxu2 }
  0x9e   :  { %v140_v44 = vpop.f32.mrf.mxu3  ;;  %v151_v45 = vpop.f32.mrf.mxu0 }
  0x9f   :  { %v164_v46 = vpop.f32.mrf.mxu1  ;;  %v152_v47 = vadd.f32 %v151_v45, %v139_v42  ;;  %v681_v45 = vld [vmem:[%s908_s4 + $0x2] ss:$0 sm:$0xff] }
  0xa1   :  { %v165_v48 = vadd.f32 %v164_v46, %v152_v47 }
  0xa3   :  { %v169_v49 = vsel %vm168_vm0, %v165_v48, 0.0  ;;  %v172_v52 = vmul.f32 %v165_v48, %v165_v48 }
  0xa4   :  { %170 = vadd.xlane.f32.xlu0 %v169_v49 }
  0xa5   :  { %v173_v53 = vsel %vm168_vm0, %v172_v52, 0.0 }
  0xa6   :  { %v153_v50 = vpop.f32.mrf.mxu0 }
  0xa7   :  { %v166_v51 = vpop.f32.mrf.mxu1 }
  0xac   :  { %174 = vadd.xlane.f32.xlu0 %v173_v53  ;;  %v671_v53 = vld [vmem:[%s906_s2 + $0x10] sm:$0xff] }
  0xad   :  { %v330_v55 = vsel %vm209_vm1, %v671_v53, 0 }
  0xae   :  { %339 = vmatpush.bf16.xpose.msra.mxu0 %v330_v55 }
 0x117   :  { %v171_v54 = vpop.xlane.xlu0 %170 }
 0x118   :  { %v176_v56 = vmul.f32 0.0625, %v171_v54 }
 0x11a   :  { %v178_v59 = vmul.f32 %v176_v56, %v176_v56  ;;  %v181_v6 = vsub.f32 %v165_v48, %v176_v56 }
 0x11f   :  { %v175_v58 = vpop.xlane.xlu0 %174 }
 0x120   :  { %v177_v60 = vmul.f32 0.0625, %v175_v58 }
 0x122   :  { %v179_v61 = vsub.f32 %v177_v60, %v178_v59 }
 0x124   :  { %v180_v62 = vmax.f32 %v179_v61, 0.0 }
 0x126   :  { %v182_v63 = vadd.f32 1e-05, %v180_v62 }
 0x128   :  { %687 = vrsqrt.f32 %v182_v63  ;;  %vm189_vm3 = vweird.f32 %v182_v63 }
 0x12e   :  { %v688_v0 = vpop.eup %687 }
 0x12f   :  { %v184_v1 = vmul.f32 %v688_v0, %v182_v63  ;;  %vm190_vm2 = vweird.f32 %v688_v0 }
 0x130   :  { %vm191_vm4 = vmor %vm189_vm3, %vm190_vm2 }
 0x131   :  { %v185_v2 = vmul.f32 %v688_v0, %v184_v1 }
 0x133   :  { %v186_v3 = vmul.f32 0.5, %v185_v2 }
 0x135   :  { %v187_v4 = vsub.f32 1.5, %v186_v3 }
 0x137   :  { %v188_v5 = vmul.f32 %v688_v0, %v187_v4 }
 0x139   :  { %v192_v8 = vsel %vm191_vm4, %v688_v0, %v188_v5 }
 0x13a   :  { %v193_v9 = vmul.f32 %v192_v8, %v181_v6 }
 0x13c   :  { %v195_v11 = vmul.f32 %v817_v7, %v193_v9 }
 0x13e   :  { %v197_v12 = vadd.f32 %v822_v10, %v195_v11 }
 0x140   :  { %v198_v13 = vmax.f32 %v197_v12, 0.0 }
 0x142   :  { %v199_v14 = vpack.c.bf16 %v198_v13, %v198_v13  ;;  %v682_v13 = vld [vmem:[%s908_s4 + $0x3] ss:$0 sm:$0xff] }
 0x144   :  { %622 = vmatmul.msk.bf16.vlgmr.msrb.gmra.mxu2 %vm209_vm1, %v199_v14 }
 0x1c7   :  { %v225_v16 = vpop.f32.mrf.mxu2 }
 0x1c8   :  { %v226_v17 = vadd.f32 %v680_v15, %v225_v16 }
 0x1ca   :  { %v229_v18 = vsel %vm168_vm0, %v226_v17, 0.0  ;;  %v232_v19 = vmul.f32 %v226_v17, %v226_v17 }
 0x1cb   :  { %230 = vadd.xlane.f32.xlu1 %v229_v18 }
 0x1cc   :  { %v233_v21 = vsel %vm168_vm0, %v232_v19, 0.0 }
 0x1cf   :  { %v227_v20 = vpop.f32.mrf.mxu2 }
 0x1d0   :  { %v672_v20 = vld [vmem:[%s906_s2 + $0x18] sm:$0xff] }
 0x1d3   :  { %234 = vadd.xlane.f32.xlu1 %v233_v21 }
 0x23e   :  { %v231_v22 = vpop.xlane.xlu1 %230 }
 0x23f   :  { %v236_v24 = vmul.f32 0.0625, %v231_v22  ;;  %v388_v22 = vsel %vm209_vm1, %v672_v20, 0 }
 0x240   :  { %397 = vmatpush.bf16.xpose.msra.mxu1 %v388_v22 }
 0x241   :  { %v238_v27 = vmul.f32 %v236_v24, %v236_v24  ;;  %v241_v38 = vsub.f32 %v226_v17, %v236_v24 }
 0x246   :  { %v235_v26 = vpop.xlane.xlu1 %234 }
 0x247   :  { %v237_v28 = vmul.f32 0.0625, %v235_v26 }
 0x249   :  { %v239_v29 = vsub.f32 %v237_v28, %v238_v27 }
 0x24b   :  { %v240_v30 = vmax.f32 %v239_v29, 0.0 }
 0x24d   :  { %v242_v31 = vadd.f32 1e-05, %v240_v30 }
 0x24f   :  { %689 = vrsqrt.f32 %v242_v31  ;;  %vm249_vm6 = vweird.f32 %v242_v31 }
 0x255   :  { %v690_v32 = vpop.eup %689 }
 0x256   :  { %v244_v33 = vmul.f32 %v690_v32, %v242_v31  ;;  %vm250_vm5 = vweird.f32 %v690_v32 }
 0x257   :  { %vm251_vm7 = vmor %vm249_vm6, %vm250_vm5 }
 0x258   :  { %v245_v34 = vmul.f32 %v690_v32, %v244_v33 }
 0x25a   :  { %v246_v35 = vmul.f32 0.5, %v245_v34 }
 0x25c   :  { %v247_v36 = vsub.f32 1.5, %v246_v35 }
 0x25e   :  { %v248_v37 = vmul.f32 %v690_v32, %v247_v36 }
 0x260   :  { %v252_v39 = vsel %vm251_vm7, %v690_v32, %v248_v37 }
 0x261   :  { %v253_v40 = vmul.f32 %v252_v39, %v241_v38 }
 0x263   :  { %v254_v41 = vmul.f32 %v817_v7, %v253_v40 }
 0x265   :  { %v255_v42 = vadd.f32 %v822_v10, %v254_v41 }
 0x267   :  { %v256_v43 = vmax.f32 %v255_v42, 0.0 }
 0x269   :  { %v257_v44 = vpack.c.bf16 %v256_v43, %v256_v43  ;;  %v683_v43 = vld [vmem:[%s908_s4 + $0x4] ss:$0 sm:$0xff] }
 0x26b   :  { %629 = vmatmul.msk.bf16.vlgmr.msrb.gmra.mxu3 %vm209_vm1, %v257_v44 }
 0x2ee   :  { %v283_v46 = vpop.f32.mrf.mxu3 }
 0x2ef   :  { %v284_v47 = vadd.f32 %v681_v45, %v283_v46 }
 0x2f1   :  { %v287_v48 = vsel %vm168_vm0, %v284_v47, 0.0  ;;  %v290_v49 = vmul.f32 %v284_v47, %v284_v47 }
 0x2f2   :  { %288 = vadd.xlane.f32.xlu2 %v287_v48 }
 0x2f3   :  { %v291_v51 = vsel %vm168_vm0, %v290_v49, 0.0 }
 0x2f6   :  { %v285_v50 = vpop.f32.mrf.mxu3 }
 0x2f7   :  { %v673_v50 = vld [vmem:[%s906_s2 + $0x20] sm:$0xff] }
 0x2fa   :  { %292 = vadd.xlane.f32.xlu2 %v291_v51 }
 0x365   :  { %v289_v52 = vpop.xlane.xlu2 %288 }
 0x366   :  { %v294_v54 = vmul.f32 0.0625, %v289_v52  ;;  %v446_v52 = vsel %vm209_vm1, %v673_v50, 0 }
 0x367   :  { %455 = vmatpush.bf16.xpose.msra.mxu2 %v446_v52 }
 0x368   :  { %v296_v57 = vmul.f32 %v294_v54, %v294_v54  ;;  %v299_v4 = vsub.f32 %v284_v47, %v294_v54 }
 0x36d   :  { %v293_v56 = vpop.xlane.xlu2 %292 }
 0x36e   :  { %v295_v58 = vmul.f32 0.0625, %v293_v56 }
 0x370   :  { %v297_v59 = vsub.f32 %v295_v58, %v296_v57 }
 0x372   :  { %v298_v60 = vmax.f32 %v297_v59, 0.0 }
 0x374   :  { %v300_v61 = vadd.f32 1e-05, %v298_v60 }
 0x376   :  { %691 = vrsqrt.f32 %v300_v61  ;;  %vm307_vm9 = vweird.f32 %v300_v61 }
 0x37c   :  { %v692_v62 = vpop.eup %691 }
 0x37d   :  { %v302_v63 = vmul.f32 %v692_v62, %v300_v61  ;;  %vm308_vm8 = vweird.f32 %v692_v62 }
 0x37e   :  { %vm309_vm10 = vmor %vm307_vm9, %vm308_vm8  ;;  %vm576_vm8 = vcmask 58368  }
 0x37f   :  { %v303_v0 = vmul.f32 %v692_v62, %v302_v63 }
 0x381   :  { %v304_v1 = vmul.f32 0.5, %v303_v0 }
 0x383   :  { %v305_v2 = vsub.f32 1.5, %v304_v1 }
 0x385   :  { %v306_v3 = vmul.f32 %v692_v62, %v305_v2 }
 0x387   :  { %v310_v5 = vsel %vm309_vm10, %v692_v62, %v306_v3 }
 0x388   :  { %v311_v6 = vmul.f32 %v310_v5, %v299_v4 }
 0x38a   :  { %v312_v8 = vmul.f32 %v817_v7, %v311_v6 }
 0x38c   :  { %v313_v9 = vadd.f32 %v822_v10, %v312_v8 }
 0x38e   :  { %v314_v11 = vmax.f32 %v313_v9, 0.0 }
 0x390   :  { %v315_v12 = vpack.c.bf16 %v314_v11, %v314_v11  ;;  %v684_v11 = vld [vmem:[%s908_s4 + $0x5] ss:$0 sm:$0xff] }
 0x392   :  { %636 = vmatmul.msk.bf16.vlgmr.msra.gmra.mxu0 %vm209_vm1, %v315_v12 }
 0x40f   :  { %v341_v14 = vpop.f32.mrf.mxu0 }
 0x410   :  { %v342_v15 = vadd.f32 %v682_v13, %v341_v14 }
 0x412   :  { %v345_v16 = vsel %vm168_vm0, %v342_v15, 0.0  ;;  %v348_v17 = vmul.f32 %v342_v15, %v342_v15 }
 0x413   :  { %346 = vadd.xlane.f32.xlu0 %v345_v16 }
 0x414   :  { %v349_v18 = vsel %vm168_vm0, %v348_v17, 0.0 }
 0x415   :  { %350 = vadd.xlane.f32.xlu1 %v349_v18  ;;  %v674_v18 = vld [vmem:[%s906_s2 + $0x28] sm:$0xff] }
 0x416   :  { %v504_v20 = vsel %vm209_vm1, %v674_v18, 0 }
 0x417   :  { %v343_v19 = vpop.f32.mrf.mxu0  ;;  %513 = vmatpush.bf16.xpose.msra.mxu3 %v504_v20 }
 0x486   :  { %v347_v21 = vpop.xlane.xlu0 %346 }
 0x487   :  { %v352_v23 = vmul.f32 0.0625, %v347_v21 }
 0x488   :  { %v351_v24 = vpop.xlane.xlu1 %350 }
 0x489   :  { %v354_v25 = vmul.f32 %v352_v23, %v352_v23  ;;  %v353_v26 = vmul.f32 0.0625, %v351_v24  ;;  %v357_v36 = vsub.f32 %v342_v15, %v352_v23 }
 0x48b   :  { %v355_v27 = vsub.f32 %v353_v26, %v354_v25 }
 0x48d   :  { %v356_v28 = vmax.f32 %v355_v27, 0.0 }
 0x48f   :  { %v358_v29 = vadd.f32 1e-05, %v356_v28 }
 0x491   :  { %693 = vrsqrt.f32 %v358_v29  ;;  %vm365_vm12 = vweird.f32 %v358_v29 }
 0x497   :  { %v694_v30 = vpop.eup %693 }
 0x498   :  { %v360_v31 = vmul.f32 %v694_v30, %v358_v29  ;;  %vm366_vm11 = vweird.f32 %v694_v30 }
 0x499   :  { %vm367_vm13 = vmor %vm365_vm12, %vm366_vm11 }
 0x49a   :  { %v361_v32 = vmul.f32 %v694_v30, %v360_v31 }
 0x49c   :  { %v362_v33 = vmul.f32 0.5, %v361_v32 }
 0x49e   :  { %v363_v34 = vsub.f32 1.5, %v362_v33 }
 0x4a0   :  { %v364_v35 = vmul.f32 %v694_v30, %v363_v34 }
 0x4a2   :  { %v368_v37 = vsel %vm367_vm13, %v694_v30, %v364_v35 }
 0x4a3   :  { %v369_v38 = vmul.f32 %v368_v37, %v357_v36 }
 0x4a5   :  { %v370_v39 = vmul.f32 %v817_v7, %v369_v38 }
 0x4a7   :  { %v371_v40 = vadd.f32 %v822_v10, %v370_v39 }
 0x4a9   :  { %v372_v41 = vmax.f32 %v371_v40, 0.0 }
 0x4ab   :  { %v373_v42 = vpack.c.bf16 %v372_v41, %v372_v41  ;;  %v685_v41 = vld [vmem:[%s908_s4 + $0x6] ss:$0 sm:$0xff] }
 0x4ad   :  { %643 = vmatmul.msk.bf16.vlgmr.msra.gmra.mxu1 %vm209_vm1, %v373_v42 }
 0x52a   :  { %v399_v44 = vpop.f32.mrf.mxu1 }
 0x52b   :  { %v400_v45 = vadd.f32 %v683_v43, %v399_v44 }
 0x52d   :  { %v403_v46 = vsel %vm168_vm0, %v400_v45, 0.0  ;;  %v406_v47 = vmul.f32 %v400_v45, %v400_v45 }
 0x52e   :  { %404 = vadd.xlane.f32.xlu2 %v403_v46 }
 0x52f   :  { %v407_v48 = vsel %vm168_vm0, %v406_v47, 0.0 }
 0x530   :  { %408 = vadd.xlane.f32.xlu0 %v407_v48  ;;  %v675_v48 = vld [vmem:[%s907_s3] sm:$0xff] }
 0x531   :  { %570 = vmatpush.bf16.msrb.mxu0 %v675_v48 }
 0x532   :  { %v401_v49 = vpop.f32.mrf.mxu1 }
 0x5a1   :  { %v405_v51 = vpop.xlane.xlu2 %404 }
 0x5a2   :  { %v410_v53 = vmul.f32 0.0625, %v405_v51 }
 0x5a3   :  { %v409_v54 = vpop.xlane.xlu0 %408 }
 0x5a4   :  { %v412_v55 = vmul.f32 %v410_v53, %v410_v53  ;;  %v411_v56 = vmul.f32 0.0625, %v409_v54  ;;  %v415_v2 = vsub.f32 %v400_v45, %v410_v53 }
 0x5a6   :  { %v413_v57 = vsub.f32 %v411_v56, %v412_v55 }
 0x5a8   :  { %v414_v58 = vmax.f32 %v413_v57, 0.0 }
 0x5aa   :  { %v416_v59 = vadd.f32 1e-05, %v414_v58 }
 0x5ac   :  { %695 = vrsqrt.f32 %v416_v59  ;;  %vm423_vm15 = vweird.f32 %v416_v59 }
 0x5b2   :  { %v696_v60 = vpop.eup %695 }
 0x5b3   :  { %v418_v61 = vmul.f32 %v696_v60, %v416_v59  ;;  %vm424_vm14 = vweird.f32 %v696_v60 }
 0x5b4   :  { %vm425_vm2 = vmor %vm423_vm15, %vm424_vm14 }
 0x5b5   :  { %v419_v62 = vmul.f32 %v696_v60, %v418_v61 }
 0x5b7   :  { %v420_v63 = vmul.f32 0.5, %v419_v62 }
 0x5b9   :  { %v421_v0 = vsub.f32 1.5, %v420_v63 }
 0x5bb   :  { %v422_v1 = vmul.f32 %v696_v60, %v421_v0 }
 0x5bd   :  { %v426_v3 = vsel %vm425_vm2, %v696_v60, %v422_v1 }
 0x5be   :  { %v427_v4 = vmul.f32 %v426_v3, %v415_v2 }
 0x5c0   :  { %v428_v5 = vmul.f32 %v817_v7, %v427_v4 }
 0x5c2   :  { %v429_v6 = vadd.f32 %v822_v10, %v428_v5 }
 0x5c4   :  { %v430_v8 = vmax.f32 %v429_v6, 0.0  ;;  %v686_v6 = vld [vmem:[%s909_s5] ss:$0 sm:$0xff] }
 0x5c6   :  { %v431_v9 = vpack.c.bf16 %v430_v8, %v430_v8 }
 0x5c8   :  { %650 = vmatmul.msk.bf16.vlgmr.msra.gmra.mxu2 %vm209_vm1, %v431_v9 }
 0x64b   :  { %v457_v12 = vpop.f32.mrf.mxu2 }
 0x64c   :  { %v458_v13 = vadd.f32 %v684_v11, %v457_v12 }
 0x64e   :  { %v461_v14 = vsel %vm168_vm0, %v458_v13, 0.0  ;;  %v464_v15 = vmul.f32 %v458_v13, %v458_v13 }
 0x64f   :  { %462 = vadd.xlane.f32.xlu1 %v461_v14 }
 0x650   :  { %v465_v16 = vsel %vm168_vm0, %v464_v15, 0.0 }
 0x651   :  { %466 = vadd.xlane.f32.xlu2 %v465_v16 }
 0x653   :  { %v459_v17 = vpop.f32.mrf.mxu2 }
 0x6c2   :  { %v463_v19 = vpop.xlane.xlu1 %462 }
 0x6c3   :  { %v468_v21 = vmul.f32 0.0625, %v463_v19 }
 0x6c4   :  { %v467_v22 = vpop.xlane.xlu2 %466 }
 0x6c5   :  { %v470_v23 = vmul.f32 %v468_v21, %v468_v21  ;;  %v469_v24 = vmul.f32 0.0625, %v467_v22  ;;  %v473_v34 = vsub.f32 %v458_v13, %v468_v21 }
 0x6c7   :  { %v471_v25 = vsub.f32 %v469_v24, %v470_v23 }
 0x6c9   :  { %v472_v26 = vmax.f32 %v471_v25, 0.0 }
 0x6cb   :  { %v474_v27 = vadd.f32 1e-05, %v472_v26 }
 0x6cd   :  { %697 = vrsqrt.f32 %v474_v27  ;;  %vm481_vm4 = vweird.f32 %v474_v27 }
 0x6d3   :  { %v698_v28 = vpop.eup %697 }
 0x6d4   :  { %v476_v29 = vmul.f32 %v698_v28, %v474_v27  ;;  %vm482_vm3 = vweird.f32 %v698_v28 }
 0x6d5   :  { %vm483_vm5 = vmor %vm481_vm4, %vm482_vm3 }
 0x6d6   :  { %v477_v30 = vmul.f32 %v698_v28, %v476_v29 }
 0x6d8   :  { %v478_v31 = vmul.f32 0.5, %v477_v30 }
 0x6da   :  { %v479_v32 = vsub.f32 1.5, %v478_v31 }
 0x6dc   :  { %v480_v33 = vmul.f32 %v698_v28, %v479_v32 }
 0x6de   :  { %v484_v35 = vsel %vm483_vm5, %v698_v28, %v480_v33 }
 0x6df   :  { %v485_v36 = vmul.f32 %v484_v35, %v473_v34 }
 0x6e1   :  { %v486_v37 = vmul.f32 %v817_v7, %v485_v36 }
 0x6e3   :  { %v487_v38 = vadd.f32 %v822_v10, %v486_v37 }
 0x6e5   :  { %v488_v39 = vmax.f32 %v487_v38, 0.0 }
 0x6e7   :  { %v489_v40 = vpack.c.bf16 %v488_v39, %v488_v39 }
 0x6e9   :  { %657 = vmatmul.msk.bf16.vlgmr.msra.gmra.mxu3 %vm209_vm1, %v489_v40 }
 0x76c   :  { %v515_v42 = vpop.f32.mrf.mxu3 }
 0x76d   :  { %v516_v43 = vadd.f32 %v685_v41, %v515_v42 }
 0x76f   :  { %v519_v44 = vsel %vm168_vm0, %v516_v43, 0.0  ;;  %v522_v45 = vmul.f32 %v516_v43, %v516_v43 }
 0x770   :  { %520 = vadd.xlane.f32.xlu0 %v519_v44 }
 0x771   :  { %v523_v46 = vsel %vm168_vm0, %v522_v45, 0.0 }
 0x772   :  { %524 = vadd.xlane.f32.xlu1 %v523_v46 }
 0x774   :  { %v517_v47 = vpop.f32.mrf.mxu3 }
 0x7e3   :  { %v521_v49 = vpop.xlane.xlu0 %520 }
 0x7e4   :  { %v526_v50 = vmul.f32 0.0625, %v521_v49 }
 0x7e5   :  { %v525_v51 = vpop.xlane.xlu1 %524 }
 0x7e6   :  { %v528_v52 = vmul.f32 %v526_v50, %v526_v50  ;;  %v527_v53 = vmul.f32 0.0625, %v525_v51  ;;  %v531_v63 = vsub.f32 %v516_v43, %v526_v50 }
 0x7e8   :  { %v529_v54 = vsub.f32 %v527_v53, %v528_v52 }
 0x7ea   :  { %v530_v55 = vmax.f32 %v529_v54, 0.0 }
 0x7ec   :  { %v532_v56 = vadd.f32 1e-05, %v530_v55 }
 0x7ee   :  { %699 = vrsqrt.f32 %v532_v56  ;;  %vm539_vm6 = vweird.f32 %v532_v56 }
 0x7f4   :  { %v700_v57 = vpop.eup %699 }
 0x7f5   :  { %v534_v58 = vmul.f32 %v700_v57, %v532_v56  ;;  %vm540_vm0 = vweird.f32 %v700_v57 }
 0x7f6   :  { %vm541_vm7 = vmor %vm539_vm6, %vm540_vm0 }
 0x7f7   :  { %v535_v59 = vmul.f32 %v700_v57, %v534_v58 }
 0x7f9   :  { %v536_v60 = vmul.f32 0.5, %v535_v59 }
 0x7fb   :  { %v537_v61 = vsub.f32 1.5, %v536_v60 }
 0x7fd   :  { %v538_v62 = vmul.f32 %v700_v57, %v537_v61 }
 0x7ff   :  { %v542_v0 = vsel %vm541_vm7, %v700_v57, %v538_v62 }
 0x800   :  { %v543_v1 = vmul.f32 %v542_v0, %v531_v63 }
 0x802   :  { %v544_v2 = vmul.f32 %v817_v7, %v543_v1 }
 0x804   :  { %v545_v3 = vadd.f32 %v822_v10, %v544_v2 }
 0x806   :  { %v546_v4 = vmax.f32 %v545_v3, 0.0 }
 0x808   :  { %v547_v5 = vpack.c.bf16 %v546_v4, %v546_v4 }
 0x80a   :  { %662 = vmatmul.msk.bf16.vlgmr.msrb.gmra.mxu0 %vm209_vm1, %v547_v5 }
 0x887   :  { %v572_v8 = vpop.f32.mrf.mxu0 }
 0x888   :  { %v573_v9 = vadd.f32 %v686_v6, %v572_v8 }
 0x88a   :  { %577 = vst.msk [vmem:[#allocation2] sm:$0x3] %vm576_vm8, %v573_v9 }
 0x88b   :  { %588 = dma.vmem_to_hbm [thread:$0]  %s584_s29, 32, %s586_s8, [#allocation3]  }
 0x88f   :  { %v574_v7 = vpop.f32.mrf.mxu0 }
 0x890   :  { %725 = dma.done.wait [#allocation3], 32  }
 0x891   :  { %726 = vsyncadd [#allocation3], 4294967264 }
 0x892   :  { %593 = vsyncpa [#allocation3], 1 }

</bundles_post_ra>
